<compile_context>
chip_gen: v6e
topology: v6e:2x2x1
jax: 0.10.0
libtpu: 0.0.40
codegen_flags: <defaults>
</compile_context>

<pallas_src>
import functools

import jax
import jax.numpy as jnp
from jax.experimental import pallas as pl
from jax.experimental.pallas import tpu as pltpu


def _round_up(x: int, m: int) -> int:
    return ((x + m - 1) // m) * m


def _cdiv(a: int, b: int) -> int:
    return -(-a // b)


def _ffnn_kernel(x_ref, w_ref, b_ref, o_ref, acc_ref):
    # x_ref: [tm, tk]  w_ref: [tk, tn]  b_ref: [1, tn] (f32)
    # o_ref: [tm, tn]  acc_ref: [tm, tn] f32 scratch (resident across K axis)
    k = pl.program_id(2)

    @pl.when(k == 0)
    def _():
        acc_ref[...] = jnp.zeros_like(acc_ref)

    acc_ref[...] += jnp.dot(
        x_ref[...], w_ref[...], preferred_element_type=jnp.float32
    )

    # Epilogue (bias + ReLU + cast) only on the final partial-sum step.
    @pl.when(k == pl.num_programs(2) - 1)
    def _():
        y = acc_ref[...] + b_ref[...]          # f32 bias broadcast over rows
        y = jnp.maximum(y, 0.0)                # activation (ReLU)
        # dropout (inference): identity
        o_ref[...] = y.astype(o_ref.dtype)


def _vmem_budget_bytes() -> int:
    """Scoped-VMEM budget, generation-aware (v7x: 64 MiB phys -> ~48 MiB cap)."""
    try:
        cap = int(pltpu.get_tpu_info().vmem_capacity_bytes)
    except Exception:
        cap = 64 * 2**20  # conservative fallback (v7x per-TensorCore VMEM)
    return min((cap * 3) // 4, 110 * 2**20)


def feed_forward_layer_v1(
    tensor,
    weight,
    bias,
    sequence_mask=None,
    *,
    compute_dtype=jnp.bfloat16,   # bf16 MXU path by default; None keeps input dtype
    out_dtype=None,               # default: same dtype as the input tensor
    tm_cap=1024,
    tn_cap=512,
    tk_cap=512,
):
    """
    :param tensor: [B, T, F_in]
    :param weight: [F_in, F_out]   (transposed vs. torch nn.Linear storage)
    :param bias:   [F_out]
    :param sequence_mask: [B, T] or None (passed through unchanged)
    :return: (out [B, T, F_out], sequence_mask)
    """
    B, T, F_in = tensor.shape
    F_out = weight.shape[1]
    M = B * T
    if out_dtype is None:
        out_dtype = tensor.dtype

    x2d = tensor.reshape(M, F_in)
    if compute_dtype is not None and x2d.dtype != compute_dtype:
        x2d = x2d.astype(compute_dtype)
    if compute_dtype is not None and weight.dtype != compute_dtype:
        weight = weight.astype(compute_dtype)
    in_dtype = x2d.dtype
    in_bytes = jnp.dtype(in_dtype).itemsize
    out_bytes = jnp.dtype(out_dtype).itemsize

    budget = _vmem_budget_bytes()
    sublane = 8 if in_bytes >= 4 else (16 if in_bytes == 2 else 32)

    # --- tm: balanced split of M to minimize padding waste --------------------
    m_tiles = max(1, _cdiv(M, tm_cap))
    tm = _round_up(_cdiv(M, m_tiles), sublane)

    K_full = _round_up(F_in, 128)
    N_full = _round_up(F_out, 128)

    # --- weight-stationary fast path: whole weight panel resident in VMEM -----
    if 2 * K_full * N_full * in_bytes <= budget // 3:
        tk, tn = K_full, N_full
    else:
        tk = min(_round_up(tk_cap, 128), K_full)
        tn = min(_round_up(tn_cap, 128), N_full)

    def working_set(tm_, tn_, tk_):
        # Buffered(2) inputs/outputs + f32 accumulator + bias.
        return (2 * (tm_ * tk_ + tk_ * tn_) * in_bytes
                + 2 * tm_ * tn_ * out_bytes
                + tm_ * tn_ * 4
                + 2 * tn_ * 4)

    while working_set(tm, tn, tk) > int(0.8 * budget):
        if tk >= tn and tk >= tm and tk > 128:
            tk = max(128, _round_up(tk // 2, 128))
        elif tn >= tm and tn > 128:
            tn = max(128, _round_up(tn // 2, 128))
        elif tm > sublane:
            tm = max(sublane, _round_up(tm // 2, sublane))
        else:
            break

    # --- keep both v7x TensorCores busy: avoid a degenerate 1x1 parallel grid --
    if _round_up(M, tm) // tm == 1 and _round_up(F_out, tn) // tn == 1:
        if tn >= 256 and tn % 256 == 0:
            tn //= 2
        elif M >= 2 * sublane:
            tm = _round_up(_cdiv(M, 2), sublane)

    M_pad = _round_up(M, tm)
    N_pad = _round_up(F_out, tn)
    K_pad = _round_up(F_in, tk)
    grid = (M_pad // tm, N_pad // tn, K_pad // tk)

    # --- pad only when needed (zero padding is GEMM-neutral) ------------------
    x_p = x2d if (M_pad == M and K_pad == F_in) else jnp.pad(
        x2d, ((0, M_pad - M), (0, K_pad - F_in)))
    w_p = weight if (K_pad == F_in and N_pad == F_out) else jnp.pad(
        weight, ((0, K_pad - F_in), (0, N_pad - F_out)))
    b_f32 = bias.astype(jnp.float32)
    b_p = (b_f32 if N_pad == F_out else jnp.pad(
        b_f32, ((0, N_pad - F_out),))).reshape(1, N_pad)

    ws = working_set(tm, tn, tk)
    vmem_limit = int(min(budget, max(32 * 2**20, int(1.5 * ws))))

    # Re-streamed bytes: x is read once per N-tile, w once per M-tile.
    cost = pl.CostEstimate(
        flops=2 * M_pad * K_pad * N_pad,
        transcendentals=0,
        bytes_accessed=(M_pad * K_pad * in_bytes * grid[1]
                        + K_pad * N_pad * in_bytes * grid[0]
                        + M_pad * N_pad * out_bytes
                        + N_pad * 4 * grid[0]),
    )

    out_padded = pl.pallas_call(
        _ffnn_kernel,
        out_shape=jax.ShapeDtypeStruct((M_pad, N_pad), out_dtype),
        grid_spec=pltpu.PrefetchScalarGridSpec(
            num_scalar_prefetch=0,
            grid=grid,
            in_specs=[
                pl.BlockSpec((tm, tk), lambda i, j, k: (i, k)),   # activations
                pl.BlockSpec((tk, tn), lambda i, j, k: (k, j)),   # weight panel
                pl.BlockSpec((1, tn), lambda i, j, k: (0, j)),    # bias (resident over i, k)
            ],
            out_specs=pl.BlockSpec((tm, tn), lambda i, j, k: (i, j)),
            scratch_shapes=[pltpu.VMEM((tm, tn), jnp.float32)],
        ),
        compiler_params=pltpu.CompilerParams(
            dimension_semantics=("parallel", "parallel", "arbitrary"),
            vmem_limit_bytes=vmem_limit,
            allow_input_fusion=[True, True, True],
        ),
        cost_estimate=cost,
    )(x_p, w_p, b_p)

    out2d = out_padded if (M_pad == M and N_pad == F_out) else out_padded[:M, :F_out]
    return out2d.reshape(B, T, F_out), sequence_mask


if __name__ == "__main__":
    # Small shapes consistent with the module: [B, T, F]
    B, T, F_in, F_out = 2, 8, 32, 64

    key = jax.random.PRNGKey(0)
    k_x, k_w, k_b = jax.random.split(key, 3)

    x = jax.random.normal(k_x, (B, T, F_in), dtype=jnp.float32)
    # Deterministic parameter init (mimic nn.Linear's uniform(-1/sqrt(F_in), 1/sqrt(F_in)))
    bound = 1.0 / (F_in ** 0.5)
    weight = jax.random.uniform(k_w, (F_in, F_out), minval=-bound, maxval=bound,
                                dtype=jnp.float32)
    bias = jax.random.uniform(k_b, (F_out,), minval=-bound, maxval=bound,
                              dtype=jnp.float32)
    seq_mask = jnp.ones((B, T), dtype=jnp.bool_)

    # Reference in plain JAX (f32)
    ref = jnp.maximum(jnp.einsum("btf,fo->bto", x, weight) + bias, 0.0)

    # Default path: bf16 MXU compute, f32 accumulate/epilogue, f32 output.
    fwd = jax.jit(functools.partial(feed_forward_layer_v1))
    out, mask_out = fwd(x, weight, bias, seq_mask)
    out = jax.block_until_ready(out)
    assert out.shape == (B, T, F_out)
    assert out.dtype == x.dtype
    assert jnp.allclose(out, ref, atol=2e-2, rtol=2e-2)
    assert mask_out.shape == seq_mask.shape

    # Full-f32 compute path (tight tolerance).
    out_f32, _ = jax.jit(functools.partial(
        feed_forward_layer_v1, compute_dtype=jnp.float32))(x, weight, bias, seq_mask)
    out_f32 = jax.block_until_ready(out_f32)
    assert jnp.allclose(out_f32, ref, atol=1e-5, rtol=1e-5)

    print("KERNEL_OK")
</pallas_src>

<mosaic_0001>
module attributes {stable_mosaic.version = 11 : i64} {
  func.func @_ffnn_kernel(%arg0: i32, %arg1: i32, %arg2: i32, %arg3: memref<16x128xbf16, #tpu.memory_space<vmem>>, %arg4: memref<128x128xbf16, #tpu.memory_space<vmem>>, %arg5: memref<1x128xf32, #tpu.memory_space<vmem>>, %arg6: memref<16x128xf32, #tpu.memory_space<vmem>>, %arg7: memref<16x128xf32, #tpu.memory_space<vmem>>) attributes {dimension_semantics = [#tpu.dimension_semantics<parallel>, #tpu.dimension_semantics<parallel>, #tpu.dimension_semantics<arbitrary>], iteration_bounds = array<i64: 1, 1, 1>, scalar_prefetch = 0 : i64, scratch_operands = 1 : i64, tpu.core_type = #tpu.core_type<tc>, window_params = [{transform_indices = @transform_0, window_bounds = array<i64: 16, 128>}, {transform_indices = @transform_1, window_bounds = array<i64: 128, 128>}, {transform_indices = @transform_2, window_bounds = array<i64: 1, 128>}, {transform_indices = @transform_3, window_bounds = array<i64: 16, 128>}]} {
    %c0_i32 = arith.constant 0 : i32
    %0 = arith.cmpi eq, %arg2, %c0_i32 : i32
    %1 = arith.extui %0 : i1 to i32
    %c0_i32_0 = arith.constant 0 : i32
    %2 = arith.cmpi ne, %1, %c0_i32_0 : i32
    scf.if %2 {
      %cst_10 = arith.constant 0.000000e+00 : f32
      %12 = vector.broadcast %cst_10 : f32 to vector<16x128xf32>
      %c0_11 = arith.constant 0 : index
      %c0_12 = arith.constant 0 : index
      %13 = vector.load %arg7[%c0_11, %c0_12] : memref<16x128xf32, #tpu.memory_space<vmem>>, vector<16x128xf32>
      tpu.vector_store %arg7[%c0_11, %c0_12], %12 {strides = array<i32>} : memref<16x128xf32, #tpu.memory_space<vmem>>, vector<16x128xf32>,
    } else {
    }
    %c0 = arith.constant 0 : index
    %c0_1 = arith.constant 0 : index
    %3 = vector.load %arg7[%c0, %c0_1] : memref<16x128xf32, #tpu.memory_space<vmem>>, vector<16x128xf32>
    %c0_2 = arith.constant 0 : index
    %c0_3 = arith.constant 0 : index
    %4 = vector.load %arg3[%c0_2, %c0_3] : memref<16x128xbf16, #tpu.memory_space<vmem>>, vector<16x128xbf16>
    %c0_4 = arith.constant 0 : index
    %c0_5 = arith.constant 0 : index
    %5 = vector.load %arg4[%c0_4, %c0_5] : memref<128x128xbf16, #tpu.memory_space<vmem>>, vector<128x128xbf16>
    %cst = arith.constant dense<0.000000e+00> : vector<16x128xf32>
    %6 = tpu.matmul %4, %5, %cst {dimension_numbers = #tpu.dot_dimension_numbers<[1], [0], [0], [1], [0, 0, 1, 1], [], []>} : vector<16x128xbf16>, vector<128x128xbf16>, vector<16x128xf32> -> vector<16x128xf32>
    %7 = arith.addf %3, %6 : vector<16x128xf32>
    %c0_6 = arith.constant 0 : index
    %c0_7 = arith.constant 0 : index
    %8 = vector.load %arg7[%c0_6, %c0_7] : memref<16x128xf32, #tpu.memory_space<vmem>>, vector<16x128xf32>
    tpu.vector_store %arg7[%c0_6, %c0_7], %7 {strides = array<i32>} : memref<16x128xf32, #tpu.memory_space<vmem>>, vector<16x128xf32>,
    %c0_i32_8 = arith.constant 0 : i32
    %9 = arith.cmpi eq, %arg2, %c0_i32_8 : i32
    %10 = arith.extui %9 : i1 to i32
    %c0_i32_9 = arith.constant 0 : i32
    %11 = arith.cmpi ne, %10, %c0_i32_9 : i32
    scf.if %11 {
      %c0_10 = arith.constant 0 : index
      %c0_11 = arith.constant 0 : index
      %12 = vector.load %arg7[%c0_10, %c0_11] : memref<16x128xf32, #tpu.memory_space<vmem>>, vector<16x128xf32>
      %c0_12 = arith.constant 0 : index
      %c0_13 = arith.constant 0 : index
      %13 = vector.load %arg5[%c0_12, %c0_13] : memref<1x128xf32, #tpu.memory_space<vmem>>, vector<1x128xf32>
      %14 = vector.broadcast %13 : vector<1x128xf32> to vector<16x128xf32>
      %15 = arith.addf %12, %14 : vector<16x128xf32>
      %cst_14 = arith.constant 0.000000e+00 : f32
      %16 = vector.broadcast %cst_14 : f32 to vector<16x128xf32>
      %17 = arith.maximumf %15, %16 : vector<16x128xf32>
      %c0_15 = arith.constant 0 : index
      %c0_16 = arith.constant 0 : index
      %18 = vector.load %arg6[%c0_15, %c0_16] : memref<16x128xf32, #tpu.memory_space<vmem>>, vector<16x128xf32>
      tpu.vector_store %arg6[%c0_15, %c0_16], %17 {strides = array<i32>} : memref<16x128xf32, #tpu.memory_space<vmem>>, vector<16x128xf32>,
    } else {
    }
    return
  }
  func.func @transform_0(%arg0: i32, %arg1: i32, %arg2: i32) -> (i32, i32) {
    %c0_i32 = arith.constant 0 : i32
    return %arg0, %arg2 : i32, i32
  }
  func.func @transform_1(%arg0: i32, %arg1: i32, %arg2: i32) -> (i32, i32) {
    %c0_i32 = arith.constant 0 : i32
    return %arg2, %arg1 : i32, i32
  }
  func.func @transform_2(%arg0: i32, %arg1: i32, %arg2: i32) -> (i32, i32) {
    %c0_i32 = arith.constant 0 : i32
    %c0_i32_0 = arith.constant 0 : i32
    return %c0_i32, %arg1 : i32, i32
  }
  func.func @transform_3(%arg0: i32, %arg1: i32, %arg2: i32) -> (i32, i32) {
    %c0_i32 = arith.constant 0 : i32
    return %arg0, %arg1 : i32, i32
  }
}

</mosaic_0001>

<bundles_post_ra>
// kernel: feed_forward_layer_v1.2
= control target key start
LH: loop header
LB: loop body
LE: loop exit
PB: predicated region body
PF: predicated region fallthrough
CT: control target
= control target key end

     0   :  { %s528_s0 = inlined_call_operand.vmem [shape: bf16[32,64], index: 0, kind: input, shape index: {}]   ;;  %s529_s1 = inlined_call_operand.<no memory space> [shape: bf16[], index: 1, kind: input, shape index: {}]   ;;  %s530_s2 = inlined_call_operand.vmem [shape: bf16[16,32], index: 2, kind: input, shape index: {}]   ;;  %s531_s3 = inlined_call_operand.vmem [shape: f32[64], index: 3, kind: input, shape index: {}]   ;;  %s532_s4 = inlined_call_operand.<no memory space> [shape: f32[], index: 4, kind: input, shape index: {}]   ;;  %s533_s5 = inlined_call_operand.vmem [shape: f32[16,128], index: 5, kind: output, shape index: {}]  }
   0x1   :  { %v10_v0 = vstv %s529_s1  ;;  %v20_v1 = vstv %s532_s4 }
   0x2   :  { %v11_v2 = vunpack.i.l.bf16 %v10_v0 }
   0x3   :  { %v39_v4 = vlaneseq  ;;  %v384_v5 = vld [vmem:[%s528_s0 + $0x8] sm:$0xff]   ;;  %v80_v6 = vld [vmem:[%s528_s0] sm:$0xff]   ;;  %v466_v8 = vmov 0.0   ;;  %vm467_vm0 = vmmov 0  }
   0x4   :  { %v399_v3 = vpack.c.bf16 %v11_v2, %v11_v2  ;;  %v36_v7 = vld [vmem:[%s530_s2] sm:$0xff]   ;;  %435 = vmatprep.subr.bf16.mxu0 %v466_v8  ;;  %v126_v9 = vunpack.c.l.bf16 %v384_v5  ;;  %v149_v10 = vunpack.c.h.bf16 %v384_v5  ;;  %v81_v11 = vunpack.c.l.bf16 %v80_v6  ;;  %451 = vmatprep.mubr.msk.bf16.mxu0 %vm467_vm0, %v466_v8 }
   0x5   :  { %v103_v12 = vunpack.c.h.bf16 %v80_v6  ;;  %v40_v13 = vand.u32 127, %v39_v4  ;;  %v37_v14 = vunpack.c.l.bf16 %v36_v7  ;;  %v59_v15 = vunpack.c.h.bf16 %v36_v7 }
   0x6   :  { %425 = vst [vmem:[#allocation19 + $0x38] sm:$0xff] %v399_v3   ;;  %400 = vst [vmem:[#allocation19 + $0x10] sm:$0xff] %v399_v3  }
   0x7   :  { %405 = vst [vmem:[#allocation19 + $0x18] sm:$0xff] %v399_v3   ;;  %410 = vst [vmem:[#allocation19 + $0x20] sm:$0xff] %v399_v3   ;;  %vm86_vm1 = vcmp.lt.s32.totalorder %v40_v13, 64  ;;  %vm42_vm2 = vcmp.lt.s32.totalorder %v40_v13, 32 }
   0x8   :  { %415 = vst [vmem:[#allocation19 + $0x28] sm:$0xff] %v399_v3   ;;  %420 = vst [vmem:[#allocation19 + $0x30] sm:$0xff] %v399_v3   ;;  %v132_v16 = vsel %vm86_vm1, %v126_v9, %v11_v2  ;;  %v155_v17 = vsel %vm86_vm1, %v149_v10, %v11_v2  ;;  %v87_v18 = vsel %vm86_vm1, %v81_v11, %v11_v2 }
   0x9   :  { %v109_v19 = vsel %vm86_vm1, %v103_v12, %v11_v2  ;;  %v134_v20 = vpack.c.bf16 %v466_v8, %v132_v16  ;;  %v157_v21 = vpack.c.bf16 %v466_v8, %v155_v17  ;;  %v88_v22 = vpack.c.bf16 %v466_v8, %v87_v18 }
   0xa   :  { %v111_v23 = vpack.c.bf16 %v466_v8, %v109_v19  ;;  %v43_v24 = vsel %vm42_vm2, %v37_v14, %v11_v2  ;;  %v65_v25 = vsel %vm42_vm2, %v59_v15, %v11_v2 }
   0xb   :  { %137 = vst [vmem:[#allocation19 + $0x8] sm:$0xf] %v134_v20  ;;  %160 = vst [vmem:[#allocation19 + $0xc] sm:$0xf] %v157_v21  ;;  %v44_v26 = vpack.c.bf16 %v466_v8, %v43_v24  ;;  %v67_v27 = vpack.c.bf16 %v466_v8, %v65_v25 }
   0xc   :  { %91 = vst [vmem:[#allocation19] sm:$0xf] %v88_v22  ;;  %114 = vst [vmem:[#allocation19 + $0x4] sm:$0xf] %v111_v23 }
   0xd   :  { %v457_v28 = vld [vmem:[#allocation19 + $0x38] sm:$0xff]   ;;  %47 = vst [vmem:[#allocation18] sm:$0xf] %v44_v26  ;;  %70 = vst [vmem:[#allocation18 + $0x4] sm:$0xf] %v67_v27  ;;  %v462_v33 = vld [vmem:[#allocation19 + $0x10] sm:$0xff]  }
   0xe   :  { %436 = vmatpush3.bf16.msra.mxu0 %v457_v28  ;;  %v460_v31 = vld [vmem:[#allocation19 + $0x20] sm:$0xff]   ;;  %v461_v32 = vld [vmem:[#allocation19 + $0x18] sm:$0xff]  }
   0xf   :  { %v458_v29 = vld [vmem:[#allocation19 + $0x30] sm:$0xff]   ;;  %437 = vmatprep.subr.bf16.mxu0 %v466_v8  ;;  %v459_v30 = vld [vmem:[#allocation19 + $0x28] sm:$0xff]  }
  0x12   :  { %438 = vmatpush3.bf16.msra.mxu0 %v458_v29  ;;  %v463_v34 = vld [vmem:[#allocation19 + $0x8] sm:$0xff]  }
  0x13   :  { %439 = vmatprep.subr.bf16.mxu0 %v466_v8  ;;  %v464_v35 = vld [vmem:[#allocation19] sm:$0xff]  }
  0x14   :  { %v465_v36 = vld [vmem:[#allocation18] sm:$0xff]  }
  0x16   :  { %440 = vmatpush3.bf16.msra.mxu0 %v459_v30 }
  0x17   :  { %441 = vmatprep.subr.bf16.mxu0 %v466_v8 }
  0x1a   :  { %442 = vmatpush3.bf16.msra.mxu0 %v460_v31 }
  0x1b   :  { %443 = vmatprep.subr.bf16.mxu0 %v466_v8 }
  0x1e   :  { %444 = vmatpush3.bf16.msra.mxu0 %v461_v32 }
  0x1f   :  { %445 = vmatprep.subr.bf16.mxu0 %v466_v8 }
  0x22   :  { %446 = vmatpush3.bf16.msra.mxu0 %v462_v33 }
  0x23   :  { %447 = vmatprep.subr.bf16.mxu0 %v466_v8 }
  0x26   :  { %448 = vmatpush3.bf16.msra.mxu0 %v463_v34 }
  0x27   :  { %449 = vmatprep.subr.bf16.mxu0 %v466_v8 }
  0x2a   :  { %450 = vmatpush3.bf16.msra.mxu0 %v464_v35 }
  0x2d   :  { %452 = vmatmul.mubr.bf16.vlgmr.msra.gmra.mxu0 %v465_v36 }
  0xed   :  { %v344_v37 = vpop.f32.mrf.mxu0 }
  0xef   :  { %v453_v38 = vpop.f32.mrf.mxu0 }
  0xf1   :  { %v347_v39 = vpop.f32.mrf.mxu0 }
  0xf3   :  { %v454_v40 = vpop.f32.mrf.mxu0 }
  0xf4   :  { %v377_v41 = vld [vmem:[%s531_s3] sm:$0x1]  ;;  %vm379_vm3 = vcmp.lt.s32.totalorder %v39_v4, 64 }
  0xf5   :  { %v380_v42 = vsel %vm379_vm3, %v377_v41, %v20_v1 }
  0xf6   :  { %381 = vst [vmem:[#allocation21] sm:$0x1] %v380_v42 }
  0xfd   :  { %v395_v43 = vld [vmem:[#allocation21] ss:$0 sm:$0xff] }
  0xfe   :  { %v367_v44 = vadd.f32 %v395_v43, %v344_v37  ;;  %v368_v45 = vadd.f32 %v395_v43, %v347_v39 }
 0x100   :  { %v369_v46 = vmax.f32 %v367_v44, 0.0  ;;  %v370_v47 = vmax.f32 %v368_v45, 0.0 }
 0x102   :  { %371 = vst [vmem:[%s533_s5] sm:$0xff] %v369_v46  ;;  %372 = vst [vmem:[%s533_s5 + $0x8] sm:$0xff] %v370_v47 }

</bundles_post_ra>
